<compile_context>
chip_gen: v6e
topology: v6e:2x2x1
jax: 0.10.0
libtpu: 0.0.40
codegen_flags: <defaults>
</compile_context>

<pallas_src>
import functools

import numpy as np

import jax
import jax.numpy as jnp
from jax import lax
from jax.experimental import pallas as pl
from jax.experimental.pallas import tpu as pltpu


def _vmem_limit_bytes():
    """Generation-aware VMEM budget (half of physical, capped at 64 MiB)."""
    try:
        info = pltpu.get_tpu_info()
        cap = int(getattr(info, "vmem_capacity_bytes", 64 * 1024 * 1024))
    except Exception:
        cap = 64 * 1024 * 1024
    return max(16 * 1024 * 1024, min(cap // 2, 64 * 1024 * 1024))


_VMEM_LIMIT = _vmem_limit_bytes()


# ----------------------------------------------------------------------------
# In-kernel exact-ish GELU (erf via Abramowitz & Stegun 7.1.26, |err| < 1.5e-7,
# i.e. float32 accuracy) built only from ops with guaranteed Mosaic lowerings
# (abs / mul / add / div / exp / where).
# ----------------------------------------------------------------------------
def _erf_f32(x):
    a1, a2, a3, a4, a5 = (0.254829592, -0.284496736, 1.421413741,
                          -1.453152027, 1.061405429)
    p = 0.3275911
    ax = jnp.abs(x)
    t = 1.0 / (1.0 + p * ax)
    poly = t * (a1 + t * (a2 + t * (a3 + t * (a4 + t * a5))))
    y = 1.0 - poly * jnp.exp(-ax * ax)
    return jnp.where(x < 0.0, -y, y)


def _gelu_exact_inkernel(x):
    return 0.5 * x * (1.0 + _erf_f32(x * 0.7071067811865476))


def _gelu(x):
    return jax.nn.gelu(x, approximate=False)


# ----------------------------------------------------------------------------
# Pallas kernel 1: fused spectral complex contraction
#   out[b, o, l] = sum_i x[b, i, l] (*) w[i, o, l]      (complex, elementwise in l)
# where l packs [mode-block(2), modes1, modes2] on the lane axis.
# ----------------------------------------------------------------------------
def _spectral_kernel(x_ref, w_ref, o_ref):
    # x_ref: (Cin, 1, 2, Lp)    [cin, batch-block, re/im, packed modes]
    # w_ref: (Cin, 2, Cout, Lp) [cin, re/im, cout, packed modes]
    # o_ref: (1, 2, Cout, Lp)
    cin = w_ref.shape[0]
    cout = w_ref.shape[2]
    lp = w_ref.shape[3]

    acc_re = jnp.zeros((cout, lp), jnp.float32)
    acc_im = jnp.zeros((cout, lp), jnp.float32)

    # Fully unrolled Cin reduction (Cin <= 48) with register-carried accumulators;
    # equivalent to lax.fori_loop(..., unroll=True) but with static ref indices.
    for i in range(cin):
        xr = x_ref[i, 0, 0:1, :]      # (1, Lp)   sublane-broadcast below
        xi = x_ref[i, 0, 1:2, :]      # (1, Lp)
        wr = w_ref[i, 0]              # (Cout, Lp)
        wi = w_ref[i, 1]              # (Cout, Lp)
        acc_re = acc_re + (xr * wr - xi * wi)
        acc_im = acc_im + (xr * wi + xi * wr)

    # Single store per output tile (no per-iteration RMW of o_ref).
    o_ref[0, 0] = acc_re
    o_ref[0, 1] = acc_im


def _spectral_contract(xs, w_packed):
    """xs: (Cin, B, 2, Lp)  w_packed: (Cin, 2, Cout, Lp)  ->  (B, 2, Cout, Lp)."""
    cin, batch, _, lp = xs.shape
    cout = w_packed.shape[2]
    flops = 8 * batch * cin * cout * lp
    bytes_accessed = 4 * (int(xs.size) + int(w_packed.size) + batch * 2 * cout * lp)
    return pl.pallas_call(
        _spectral_kernel,
        out_shape=jax.ShapeDtypeStruct((batch, 2, cout, lp), jnp.float32),
        grid_spec=pltpu.PrefetchScalarGridSpec(
            num_scalar_prefetch=0,
            grid=(batch,),
            in_specs=[
                pl.BlockSpec((cin, 1, 2, lp), lambda b: (0, b, 0, 0)),
                pl.BlockSpec((cin, 2, cout, lp), lambda b: (0, 0, 0, 0)),
            ],
            out_specs=pl.BlockSpec((1, 2, cout, lp), lambda b: (b, 0, 0, 0)),
        ),
        compiler_params=pltpu.CompilerParams(
            dimension_semantics=("parallel",),
            vmem_limit_bytes=_VMEM_LIMIT,
        ),
        cost_estimate=pl.CostEstimate(flops=int(flops), transcendentals=0,
                                      bytes_accessed=int(bytes_accessed)),
    )(xs, w_packed)


# ----------------------------------------------------------------------------
# Pallas kernel 2: channels-first channel matmul (1x1 conv), spatially tiled
#   out[b, o, s] = sum_i w[o, i] * x[b, i, s] + bias[o]
# ----------------------------------------------------------------------------
def _pw_conv_kernel(x_ref, w_ref, b_ref, o_ref):
    # x_ref: (1, Cin, St), w_ref: (Cout, Cin), b_ref: (Cout, 1), o_ref: (1, Cout, St)
    y = jnp.dot(w_ref[...], x_ref[0], preferred_element_type=jnp.float32)
    o_ref[0] = y + b_ref[...]


def _choose_s_tile(s, max_tile=2048):
    if s <= max_tile:
        return s
    for t in range(max_tile, 127, -128):
        if s % t == 0:
            return t
    return s


def pointwise_conv(x_bcs, weight, bias):
    """x: (B, Cin, S) channels-first; weight: (Cout, Cin); bias: (Cout,)."""
    batch, cin, s = x_bcs.shape
    cout = weight.shape[0]
    st = _choose_s_tile(s)
    grid = (batch, s // st)
    flops = 2 * batch * s * cin * cout
    bytes_accessed = 4 * (batch * cin * s + cout * cin + cout + batch * cout * s)
    return pl.pallas_call(
        _pw_conv_kernel,
        out_shape=jax.ShapeDtypeStruct((batch, cout, s), jnp.float32),
        grid_spec=pltpu.PrefetchScalarGridSpec(
            num_scalar_prefetch=0,
            grid=grid,
            in_specs=[
                pl.BlockSpec((1, cin, st), lambda b, si: (b, 0, si)),
                pl.BlockSpec((cout, cin), lambda b, si: (0, 0)),
                pl.BlockSpec((cout, 1), lambda b, si: (0, 0)),
            ],
            out_specs=pl.BlockSpec((1, cout, st), lambda b, si: (b, 0, si)),
        ),
        compiler_params=pltpu.CompilerParams(
            dimension_semantics=("parallel", "parallel"),
            vmem_limit_bytes=_VMEM_LIMIT,
        ),
        cost_estimate=pl.CostEstimate(flops=int(flops), transcendentals=0,
                                      bytes_accessed=int(bytes_accessed)),
    )(x_bcs, weight, bias.reshape(cout, 1))


# ----------------------------------------------------------------------------
# Pallas kernel 3: channels-last dense matmul with fused bias + activation
#   out[b, s, o] = act( sum_i x[b, s, i] * w[i, o] + bias[o] )
# ----------------------------------------------------------------------------
def _dense_kernel(x_ref, w_ref, b_ref, o_ref, *, act):
    # x_ref: (1, St, Cin), w_ref: (Cin, Cout), b_ref: (1, Cout), o_ref: (1, St, Cout)
    y = jnp.dot(x_ref[0], w_ref[...], preferred_element_type=jnp.float32)
    y = y + b_ref[...]
    if act == "gelu":
        y = _gelu_exact_inkernel(y)
    elif act == "tanh":
        y = jnp.tanh(y)
    o_ref[0] = y


def dense_apply(x_bsc, weight_io, bias, act="none"):
    """x: (B, S, Cin) channels-last; weight: (Cin, Cout); bias: (Cout,)."""
    batch, s, cin = x_bsc.shape
    cout = weight_io.shape[1]
    st = _choose_s_tile(s)
    grid = (batch, s // st)
    flops = 2 * batch * s * cin * cout
    trans = batch * s * cout if act in ("gelu", "tanh") else 0
    bytes_accessed = 4 * (batch * s * cin + cin * cout + cout + batch * s * cout)
    kernel = functools.partial(_dense_kernel, act=act)
    return pl.pallas_call(
        kernel,
        out_shape=jax.ShapeDtypeStruct((batch, s, cout), jnp.float32),
        grid_spec=pltpu.PrefetchScalarGridSpec(
            num_scalar_prefetch=0,
            grid=grid,
            in_specs=[
                pl.BlockSpec((1, st, cin), lambda b, si: (b, si, 0)),
                pl.BlockSpec((cin, cout), lambda b, si: (0, 0)),
                pl.BlockSpec((1, cout), lambda b, si: (0, 0)),
            ],
            out_specs=pl.BlockSpec((1, st, cout), lambda b, si: (b, si, 0)),
        ),
        compiler_params=pltpu.CompilerParams(
            dimension_semantics=("parallel", "parallel"),
            vmem_limit_bytes=_VMEM_LIMIT,
        ),
        cost_estimate=pl.CostEstimate(flops=int(flops), transcendentals=int(trans),
                                      bytes_accessed=int(bytes_accessed)),
    )(x_bsc, weight_io, bias.reshape(1, cout))


# ----------------------------------------------------------------------------
# Bicubic (align_corners=True) resize via dense interpolation matrices (XLA).
# ----------------------------------------------------------------------------
def _cubic_weight(t, a=-0.75):
    at = np.abs(t)
    at2, at3 = at * at, at * at * at
    return np.where(at <= 1.0, (a + 2) * at3 - (a + 3) * at2 + 1.0,
                    np.where(at < 2.0, a * at3 - 5 * a * at2 + 8 * a * at - 4 * a, 0.0))


def _bicubic_matrix(in_size, out_size):
    if out_size > 1:
        src = np.arange(out_size, dtype=np.float64) * (in_size - 1) / (out_size - 1)
    else:
        src = np.zeros((1,), dtype=np.float64)
    x0 = np.floor(src).astype(np.int64)
    frac = src - x0
    mat = np.zeros((out_size, in_size), dtype=np.float64)
    rows = np.arange(out_size)
    for tap in range(-1, 3):
        idx = np.clip(x0 + tap, 0, in_size - 1)
        np.add.at(mat, (rows, idx), _cubic_weight(frac - tap))
    return jnp.asarray(mat, dtype=jnp.float32)


def bicubic_resize_nchw(x, out_h, out_w):
    _, _, h, w = x.shape
    mh = _bicubic_matrix(h, out_h)
    mw = _bicubic_matrix(w, out_w)
    y = jnp.einsum('oh,bchw->bcow', mh, x)
    y = jnp.einsum('pw,bcow->bcop', mw, y)
    return y


# ----------------------------------------------------------------------------
# Modules
# ----------------------------------------------------------------------------
class SpectralConv2d:
    def __init__(self, in_channels, out_channels, dim1, dim2,
                 modes1=None, modes2=None, key=None):
        self.in_channels = int(in_channels)
        self.out_channels = int(out_channels)
        self.dim1 = int(dim1)
        self.dim2 = int(dim2)
        if modes1 is not None:
            self.modes1 = int(modes1)
            self.modes2 = int(modes2)
        else:
            self.modes1 = self.dim1 // 2 - 1
            self.modes2 = self.dim2 // 2
        self.scale = (1.0 / (2 * self.in_channels)) ** 0.5

        if key is None:
            key = jax.random.PRNGKey(0)
        k1, k2, k3, k4 = jax.random.split(key, 4)
        shp = (self.in_channels, self.out_channels, self.modes1, self.modes2)
        inv_sqrt2 = 1.0 / np.sqrt(2.0)   # torch.randn(cfloat): re/im each ~ N(0, 1/2)
        w1r = self.scale * inv_sqrt2 * jax.random.normal(k1, shp, jnp.float32)
        w1i = self.scale * inv_sqrt2 * jax.random.normal(k2, shp, jnp.float32)
        w2r = self.scale * inv_sqrt2 * jax.random.normal(k3, shp, jnp.float32)
        w2i = self.scale * inv_sqrt2 * jax.random.normal(k4, shp, jnp.float32)
        self.w1 = w1r + 1j * w1i   # kept for reference checks
        self.w2 = w2r + 1j * w2i

        # Lane axis packs [mode-block(2), modes1, modes2] -> L = 2*M.  Lane-dense for
        # M in {64, 256, 576}; only the two M=16 layers pad 32 -> 128 lanes.
        m = self.modes1 * self.modes2
        self.M = m
        self.L = 2 * m
        self.Lp = max(128, ((self.L + 127) // 128) * 128)

        # Packed weights: (Cin, 2[re/im], Cout, Lp); sublane = Cout, lane = packed modes.
        w = jnp.stack([jnp.stack([w1r, w1i], 0), jnp.stack([w2r, w2i], 0)], 0)
        w = w.reshape(2, 2, self.in_channels, self.out_channels, m)   # (blk, re/im, i, o, M)
        w = jnp.transpose(w, (2, 1, 3, 0, 4))                          # (i, re/im, o, blk, M)
        w = w.reshape(self.in_channels, 2, self.out_channels, self.L)
        self.w_packed = jnp.pad(w, ((0, 0), (0, 0), (0, 0), (0, self.Lp - self.L)))

    def __call__(self, x, dim1=None, dim2=None):
        d1 = self.dim1 if dim1 is None else int(dim1)
        d2 = self.dim2 if dim2 is None else int(dim2)
        B, Cin, H, _ = x.shape
        Cout = self.out_channels
        m1, m2 = self.modes1, self.modes2

        # TODO(synk): FFT has no Pallas primitive; rfft2/irfft2 stay in XLA.
        x_ft = jnp.fft.rfft2(x)                                   # (B, Cin, H, W//2+1)
        lo = x_ft[:, :, :m1, :m2]
        hi = x_ft[:, :, H - m1:, :m2]
        xm = jnp.stack([lo, hi], axis=2)                          # (B, Cin, 2blk, m1, m2)
        xm = xm.reshape(B, Cin, self.L)                           # lane = blk*M + r*m2 + c
        xs = jnp.stack([jnp.real(xm), jnp.imag(xm)], axis=2)      # (B, Cin, 2 re/im, L)
        xs = jnp.transpose(xs, (1, 0, 2, 3))                      # (Cin, B, 2, L)
        xs = jnp.pad(xs, ((0, 0), (0, 0), (0, 0), (0, self.Lp - self.L)))

        out = _spectral_contract(xs, self.w_packed)               # (B, 2, Cout, Lp)
        out = out[..., :self.L].reshape(B, 2, Cout, 2, m1, m2)
        out_c = lax.complex(out[:, 0], out[:, 1])                 # (B, Cout, 2blk, m1, m2)

        Wf = d2 // 2 + 1
        out_ft = jnp.zeros((B, Cout, d1, Wf), dtype=jnp.complex64)
        out_ft = out_ft.at[:, :, :m1, :m2].set(out_c[:, :, 0])
        out_ft = out_ft.at[:, :, d1 - m1:, :m2].set(out_c[:, :, 1])
        return jnp.fft.irfft2(out_ft, s=(d1, d2))


class PointwiseOp:
    """1x1 Conv2d (Pallas channel matmul) + bicubic align_corners=True resize."""

    def __init__(self, in_channel, out_channel, dim1, dim2, key):
        in_c, out_c = int(in_channel), int(out_channel)
        k1, k2 = jax.random.split(key)
        bound = 1.0 / np.sqrt(in_c)
        self.weight = jax.random.uniform(k1, (out_c, in_c), jnp.float32, -bound, bound)
        self.bias = jax.random.uniform(k2, (out_c,), jnp.float32, -bound, bound)
        self.dim1, self.dim2 = int(dim1), int(dim2)

    def __call__(self, x, dim1=None, dim2=None):
        if dim1 is None:
            dim1, dim2 = self.dim1, self.dim2
        B, C, H, W = x.shape
        y = pointwise_conv(x.reshape(B, C, H * W), self.weight, self.bias)
        y = y.reshape(B, self.weight.shape[0], H, W)
        return bicubic_resize_nchw(y, int(dim1), int(dim2))


class Dense:
    """nn.Linear over the last (channel) axis: channels-last Pallas matmul with a
    fused bias + activation epilogue (no HBM transposes)."""

    def __init__(self, in_f, out_f, key, act="none"):
        in_f, out_f = int(in_f), int(out_f)
        k1, k2 = jax.random.split(key)
        bound = 1.0 / np.sqrt(in_f)
        self.weight = jax.random.uniform(k1, (in_f, out_f), jnp.float32, -bound, bound)
        self.bias = jax.random.uniform(k2, (out_f,), jnp.float32, -bound, bound)
        self.act = act

    def __call__(self, x):
        lead = x.shape[:-1]
        cin = x.shape[-1]
        B = lead[0]
        S = 1
        for s in lead[1:]:
            S *= int(s)
        y = dense_apply(x.reshape(B, S, cin), self.weight, self.bias, act=self.act)
        return y.reshape(lead + (self.weight.shape[1],))


class Generator:
    def __init__(self, in_d_co_domain, d_co_domain, pad=0, factor=3 / 4, key=None):
        self.in_d_co_domain = in_d_co_domain
        self.d_co_domain = d_co_domain
        self.factor = factor
        self.padding = pad
        if key is None:
            key = jax.random.PRNGKey(0)
        ks = jax.random.split(key, 19)
        d, f = d_co_domain, factor

        self.fc0 = Dense(in_d_co_domain, d, ks[0], act="gelu")
        self.conv0 = SpectralConv2d(d, 2 * f * d, 48, 48, 24, 24, key=ks[1])
        self.conv1 = SpectralConv2d(2 * f * d, 4 * f * d, 32, 32, 16, 16, key=ks[2])
        self.conv2 = SpectralConv2d(4 * f * d, 8 * f * d, 16, 16, 8, 8, key=ks[3])
        self.conv2_1 = SpectralConv2d(8 * f * d, 16 * f * d, 8, 8, 4, 4, key=ks[4])
        self.conv2_9 = SpectralConv2d(16 * f * d, 8 * f * d, 16, 16, 4, 4, key=ks[5])
        self.conv3 = SpectralConv2d(16 * f * d, 4 * f * d, 32, 32, 8, 8, key=ks[6])
        self.conv4 = SpectralConv2d(8 * f * d, 2 * f * d, 48, 48, 16, 16, key=ks[7])
        self.conv5 = SpectralConv2d(4 * f * d, d, 64, 64, 24, 24, key=ks[8])
        self.w0 = PointwiseOp(d, 2 * f * d, 48, 48, ks[9])
        self.w1 = PointwiseOp(2 * f * d, 4 * f * d, 32, 32, ks[10])
        self.w2 = PointwiseOp(4 * f * d, 8 * f * d, 16, 16, ks[11])
        self.w2_1 = PointwiseOp(8 * f * d, 16 * f * d, 8, 8, ks[12])
        self.w2_9 = PointwiseOp(16 * f * d, 8 * f * d, 16, 16, ks[13])
        self.w3 = PointwiseOp(16 * f * d, 4 * f * d, 32, 32, ks[14])
        self.w4 = PointwiseOp(8 * f * d, 2 * f * d, 48, 48, ks[15])
        self.w5 = PointwiseOp(4 * f * d, d, 64, 64, ks[16])
        self.fc1 = Dense(2 * d, 4 * d, ks[17], act="gelu")
        self.fc2 = Dense(4 * d, 2, ks[18], act="tanh")

    @staticmethod
    def get_grid(shape):
        B, sx, sy = shape[0], shape[1], shape[2]
        gx = jnp.broadcast_to(
            jnp.linspace(0.0, 1.0, sx, dtype=jnp.float32).reshape(1, sx, 1, 1),
            (B, sx, sy, 1))
        gy = jnp.broadcast_to(
            jnp.linspace(0.0, 1.0, sy, dtype=jnp.float32).reshape(1, 1, sy, 1),
            (B, sx, sy, 1))
        return jnp.concatenate([gx, gy], axis=-1)

    def __call__(self, x):
        grid = self.get_grid(x.shape)
        x = jnp.concatenate([x, grid], axis=-1)
        x_fc0 = self.fc0(x)                                   # GELU fused in kernel
        x_fc0 = jnp.transpose(x_fc0, (0, 3, 1, 2))
        if self.padding != 0:
            x_fc0 = jnp.pad(x_fc0, ((0, 0), (0, 0),
                                    (0, self.padding), (0, self.padding)))
        D1, D2 = x_fc0.shape[-2], x_fc0.shape[-1]
        d1, d2 = int(D1 * self.factor), int(D2 * self.factor)

        x_c0 = _gelu(self.conv0(x_fc0, d1, d2) + self.w0(x_fc0, d1, d2))
        x_c1 = _gelu(self.conv1(x_c0, D1 // 2, D2 // 2) + self.w1(x_c0, D1 // 2, D2 // 2))
        x_c2 = _gelu(self.conv2(x_c1, D1 // 4, D2 // 4) + self.w2(x_c1, D1 // 4, D2 // 4))
        x_c2_1 = _gelu(self.conv2_1(x_c2, D1 // 8, D2 // 8)
                       + self.w2_1(x_c2, D1 // 8, D2 // 8))
        x_c2_9 = _gelu(self.conv2_9(x_c2_1, D1 // 4, D2 // 4)
                       + self.w2_9(x_c2_1, D1 // 4, D2 // 4))
        x_c2_9 = jnp.concatenate([x_c2_9, x_c2], axis=1)
        x_c3 = _gelu(self.conv3(x_c2_9, D1 // 2, D2 // 2)
                     + self.w3(x_c2_9, D1 // 2, D2 // 2))
        x_c3 = jnp.concatenate([x_c3, x_c1], axis=1)
        x_c4 = _gelu(self.conv4(x_c3, d1, d2) + self.w4(x_c3, d1, d2))
        x_c4 = jnp.concatenate([x_c4, x_c0], axis=1)
        x_c5 = _gelu(self.conv5(x_c4, D1, D2) + self.w5(x_c4, D1, D2))
        x_c5 = jnp.concatenate([x_c5, x_fc0], axis=1)
        if self.padding != 0:
            x_c5 = x_c5[..., :-self.padding, :-self.padding]
        x_c5 = jnp.transpose(x_c5, (0, 2, 3, 1))
        x_fc1 = self.fc1(x_c5)                                # GELU fused in kernel
        return self.fc2(x_fc1)                                # tanh fused in kernel


# ----------------------------------------------------------------------------
# main
# ----------------------------------------------------------------------------
if __name__ == "__main__":
    key = jax.random.PRNGKey(0)
    k_x, k_gen, k_sc, k_xs, k_d, k_dx = jax.random.split(key, 6)

    # --- unit check 1: Pallas spectral kernel vs pure-JAX einsum reference ------
    B, Cin, Cout, D1, D2 = 2, 4, 6, 16, 16
    layer = SpectralConv2d(Cin, Cout, D1, D2, key=k_sc)
    xs_in = jax.random.normal(k_xs, (B, Cin, D1, D2), jnp.float32)
    y = jax.block_until_ready(layer(xs_in))
    assert y.shape == (B, Cout, D1, D2), y.shape

    def ref_spectral(xin):
        x_ft = jnp.fft.rfft2(xin)
        m1, m2 = layer.modes1, layer.modes2
        Wf = D2 // 2 + 1
        out_ft = jnp.zeros((B, Cout, D1, Wf), dtype=jnp.complex64)
        out_ft = out_ft.at[:, :, :m1, :m2].set(
            jnp.einsum('bixy,ioxy->boxy', x_ft[:, :, :m1, :m2], layer.w1))
        out_ft = out_ft.at[:, :, D1 - m1:, :m2].set(
            jnp.einsum('bixy,ioxy->boxy', x_ft[:, :, -m1:, :m2], layer.w2))
        return jnp.fft.irfft2(out_ft, s=(D1, D2))

    y_ref = jax.block_until_ready(ref_spectral(xs_in))
    assert jnp.allclose(y, y_ref, atol=1e-3, rtol=1e-3), \
        float(jnp.max(jnp.abs(y - y_ref)))

    # --- unit check 2: channels-last dense (fused bias + GELU) vs reference -----
    dense = Dense(8, 16, k_d, act="gelu")
    xd = jax.random.normal(k_dx, (2, 8, 8, 8), jnp.float32)
    yd = jax.block_until_ready(dense(xd))
    yd_ref = jax.nn.gelu(jnp.einsum('bhwc,cd->bhwd', xd, dense.weight) + dense.bias,
                         approximate=False)
    assert jnp.allclose(yd, yd_ref, atol=2e-2, rtol=2e-2), \
        float(jnp.max(jnp.abs(yd - yd_ref)))

    # --- full Generator forward (spatial 64x64 as implied by the module dims) ---
    x = jax.random.normal(k_x, (2, 64, 64, 1), jnp.float32)
    gen = Generator(in_d_co_domain=3, d_co_domain=4, key=k_gen)
    out = jax.block_until_ready(gen(x))
    assert out.shape == (2, 64, 64, 2), out.shape
    assert bool(jnp.all(jnp.isfinite(out)))

    print("KERNEL_OK")
</pallas_src>

<mosaic_0001>
module attributes {stable_mosaic.version = 11 : i64} {
  func.func @_spectral_kernel(%arg0: i32, %arg1: memref<4x1x2x128xf32, #tpu.memory_space<vmem>>, %arg2: memref<4x2x6x128xf32, #tpu.memory_space<vmem>>, %arg3: memref<1x2x6x128xf32, #tpu.memory_space<vmem>>) attributes {dimension_semantics = [#tpu.dimension_semantics<parallel>], iteration_bounds = array<i64: 2>, scalar_prefetch = 0 : i64, scratch_operands = 0 : i64, tpu.core_type = #tpu.core_type<tc>, window_params = [{transform_indices = @transform_0, window_bounds = array<i64: 4, 1, 2, 128>}, {pipeline_mode = #tpu.pipeline_mode<synchronous>, transform_indices = @transform_1, window_bounds = array<i64: 4, 2, 6, 128>}, {transform_indices = @transform_2, window_bounds = array<i64: 1, 2, 6, 128>}]} {
    %cst = arith.constant 0.000000e+00 : f32
    %0 = vector.broadcast %cst : f32 to vector<6x128xf32>
    %cst_0 = arith.constant 0.000000e+00 : f32
    %1 = vector.broadcast %cst_0 : f32 to vector<6x128xf32>
    %c0 = arith.constant 0 : index
    %c0_1 = arith.constant 0 : index
    %c0_2 = arith.constant 0 : index
    %c0_3 = arith.constant 0 : index
    %2 = vector.load %arg1[%c0, %c0_1, %c0_2, %c0_3] : memref<4x1x2x128xf32, #tpu.memory_space<vmem>>, vector<1x1x1x128xf32>
    %3 = vector.shape_cast %2 : vector<1x1x1x128xf32> to vector<1x128xf32>
    %c0_4 = arith.constant 0 : index
    %c0_5 = arith.constant 0 : index
    %c1 = arith.constant 1 : index
    %c0_6 = arith.constant 0 : index
    %4 = vector.load %arg1[%c0_4, %c0_5, %c1, %c0_6] : memref<4x1x2x128xf32, #tpu.memory_space<vmem>>, vector<1x1x1x128xf32>
    %5 = vector.shape_cast %4 : vector<1x1x1x128xf32> to vector<1x128xf32>
    %c0_7 = arith.constant 0 : index
    %c0_8 = arith.constant 0 : index
    %c0_9 = arith.constant 0 : index
    %c0_10 = arith.constant 0 : index
    %6 = vector.load %arg2[%c0_7, %c0_8, %c0_9, %c0_10] : memref<4x2x6x128xf32, #tpu.memory_space<vmem>>, vector<1x1x6x128xf32>
    %7 = vector.shape_cast %6 : vector<1x1x6x128xf32> to vector<6x128xf32>
    %c0_11 = arith.constant 0 : index
    %c1_12 = arith.constant 1 : index
    %c0_13 = arith.constant 0 : index
    %c0_14 = arith.constant 0 : index
    %8 = vector.load %arg2[%c0_11, %c1_12, %c0_13, %c0_14] : memref<4x2x6x128xf32, #tpu.memory_space<vmem>>, vector<1x1x6x128xf32>
    %9 = vector.shape_cast %8 : vector<1x1x6x128xf32> to vector<6x128xf32>
    %10 = vector.broadcast %3 : vector<1x128xf32> to vector<6x128xf32>
    %11 = arith.mulf %10, %7 : vector<6x128xf32>
    %12 = vector.broadcast %5 : vector<1x128xf32> to vector<6x128xf32>
    %13 = arith.mulf %12, %9 : vector<6x128xf32>
    %14 = arith.subf %11, %13 : vector<6x128xf32>
    %15 = arith.addf %0, %14 : vector<6x128xf32>
    %16 = vector.broadcast %3 : vector<1x128xf32> to vector<6x128xf32>
    %17 = arith.mulf %16, %9 : vector<6x128xf32>
    %18 = vector.broadcast %5 : vector<1x128xf32> to vector<6x128xf32>
    %19 = arith.mulf %18, %7 : vector<6x128xf32>
    %20 = arith.addf %17, %19 : vector<6x128xf32>
    %21 = arith.addf %1, %20 : vector<6x128xf32>
    %c1_15 = arith.constant 1 : index
    %c0_16 = arith.constant 0 : index
    %c0_17 = arith.constant 0 : index
    %c0_18 = arith.constant 0 : index
    %22 = vector.load %arg1[%c1_15, %c0_16, %c0_17, %c0_18] : memref<4x1x2x128xf32, #tpu.memory_space<vmem>>, vector<1x1x1x128xf32>
    %23 = vector.shape_cast %22 : vector<1x1x1x128xf32> to vector<1x128xf32>
    %c1_19 = arith.constant 1 : index
    %c0_20 = arith.constant 0 : index
    %c1_21 = arith.constant 1 : index
    %c0_22 = arith.constant 0 : index
    %24 = vector.load %arg1[%c1_19, %c0_20, %c1_21, %c0_22] : memref<4x1x2x128xf32, #tpu.memory_space<vmem>>, vector<1x1x1x128xf32>
    %25 = vector.shape_cast %24 : vector<1x1x1x128xf32> to vector<1x128xf32>
    %c1_23 = arith.constant 1 : index
    %c0_24 = arith.constant 0 : index
    %c0_25 = arith.constant 0 : index
    %c0_26 = arith.constant 0 : index
    %26 = vector.load %arg2[%c1_23, %c0_24, %c0_25, %c0_26] : memref<4x2x6x128xf32, #tpu.memory_space<vmem>>, vector<1x1x6x128xf32>
    %27 = vector.shape_cast %26 : vector<1x1x6x128xf32> to vector<6x128xf32>
    %c1_27 = arith.constant 1 : index
    %c1_28 = arith.constant 1 : index
    %c0_29 = arith.constant 0 : index
    %c0_30 = arith.constant 0 : index
    %28 = vector.load %arg2[%c1_27, %c1_28, %c0_29, %c0_30] : memref<4x2x6x128xf32, #tpu.memory_space<vmem>>, vector<1x1x6x128xf32>
    %29 = vector.shape_cast %28 : vector<1x1x6x128xf32> to vector<6x128xf32>
    %30 = vector.broadcast %23 : vector<1x128xf32> to vector<6x128xf32>
    %31 = arith.mulf %30, %27 : vector<6x128xf32>
    %32 = vector.broadcast %25 : vector<1x128xf32> to vector<6x128xf32>
    %33 = arith.mulf %32, %29 : vector<6x128xf32>
    %34 = arith.subf %31, %33 : vector<6x128xf32>
    %35 = arith.addf %15, %34 : vector<6x128xf32>
    %36 = vector.broadcast %23 : vector<1x128xf32> to vector<6x128xf32>
    %37 = arith.mulf %36, %29 : vector<6x128xf32>
    %38 = vector.broadcast %25 : vector<1x128xf32> to vector<6x128xf32>
    %39 = arith.mulf %38, %27 : vector<6x128xf32>
    %40 = arith.addf %37, %39 : vector<6x128xf32>
    %41 = arith.addf %21, %40 : vector<6x128xf32>
    %c2 = arith.constant 2 : index
    %c0_31 = arith.constant 0 : index
    %c0_32 = arith.constant 0 : index
    %c0_33 = arith.constant 0 : index
    %42 = vector.load %arg1[%c2, %c0_31, %c0_32, %c0_33] : memref<4x1x2x128xf32, #tpu.memory_space<vmem>>, vector<1x1x1x128xf32>
    %43 = vector.shape_cast %42 : vector<1x1x1x128xf32> to vector<1x128xf32>
    %c2_34 = arith.constant 2 : index
    %c0_35 = arith.constant 0 : index
    %c1_36 = arith.constant 1 : index
    %c0_37 = arith.constant 0 : index
    %44 = vector.load %arg1[%c2_34, %c0_35, %c1_36, %c0_37] : memref<4x1x2x128xf32, #tpu.memory_space<vmem>>, vector<1x1x1x128xf32>
    %45 = vector.shape_cast %44 : vector<1x1x1x128xf32> to vector<1x128xf32>
    %c2_38 = arith.constant 2 : index
    %c0_39 = arith.constant 0 : index
    %c0_40 = arith.constant 0 : index
    %c0_41 = arith.constant 0 : index
    %46 = vector.load %arg2[%c2_38, %c0_39, %c0_40, %c0_41] : memref<4x2x6x128xf32, #tpu.memory_space<vmem>>, vector<1x1x6x128xf32>
    %47 = vector.shape_cast %46 : vector<1x1x6x128xf32> to vector<6x128xf32>
    %c2_42 = arith.constant 2 : index
    %c1_43 = arith.constant 1 : index
    %c0_44 = arith.constant 0 : index
    %c0_45 = arith.constant 0 : index
    %48 = vector.load %arg2[%c2_42, %c1_43, %c0_44, %c0_45] : memref<4x2x6x128xf32, #tpu.memory_space<vmem>>, vector<1x1x6x128xf32>
    %49 = vector.shape_cast %48 : vector<1x1x6x128xf32> to vector<6x128xf32>
    %50 = vector.broadcast %43 : vector<1x128xf32> to vector<6x128xf32>
    %51 = arith.mulf %50, %47 : vector<6x128xf32>
    %52 = vector.broadcast %45 : vector<1x128xf32> to vector<6x128xf32>
    %53 = arith.mulf %52, %49 : vector<6x128xf32>
    %54 = arith.subf %51, %53 : vector<6x128xf32>
    %55 = arith.addf %35, %54 : vector<6x128xf32>
    %56 = vector.broadcast %43 : vector<1x128xf32> to vector<6x128xf32>
    %57 = arith.mulf %56, %49 : vector<6x128xf32>
    %58 = vector.broadcast %45 : vector<1x128xf32> to vector<6x128xf32>
    %59 = arith.mulf %58, %47 : vector<6x128xf32>
    %60 = arith.addf %57, %59 : vector<6x128xf32>
    %61 = arith.addf %41, %60 : vector<6x128xf32>
    %c3 = arith.constant 3 : index
    %c0_46 = arith.constant 0 : index
    %c0_47 = arith.constant 0 : index
    %c0_48 = arith.constant 0 : index
    %62 = vector.load %arg1[%c3, %c0_46, %c0_47, %c0_48] : memref<4x1x2x128xf32, #tpu.memory_space<vmem>>, vector<1x1x1x128xf32>
    %63 = vector.shape_cast %62 : vector<1x1x1x128xf32> to vector<1x128xf32>
    %c3_49 = arith.constant 3 : index
    %c0_50 = arith.constant 0 : index
    %c1_51 = arith.constant 1 : index
    %c0_52 = arith.constant 0 : index
    %64 = vector.load %arg1[%c3_49, %c0_50, %c1_51, %c0_52] : memref<4x1x2x128xf32, #tpu.memory_space<vmem>>, vector<1x1x1x128xf32>
    %65 = vector.shape_cast %64 : vector<1x1x1x128xf32> to vector<1x128xf32>
    %c3_53 = arith.constant 3 : index
    %c0_54 = arith.constant 0 : index
    %c0_55 = arith.constant 0 : index
    %c0_56 = arith.constant 0 : index
    %66 = vector.load %arg2[%c3_53, %c0_54, %c0_55, %c0_56] : memref<4x2x6x128xf32, #tpu.memory_space<vmem>>, vector<1x1x6x128xf32>
    %67 = vector.shape_cast %66 : vector<1x1x6x128xf32> to vector<6x128xf32>
    %c3_57 = arith.constant 3 : index
    %c1_58 = arith.constant 1 : index
    %c0_59 = arith.constant 0 : index
    %c0_60 = arith.constant 0 : index
    %68 = vector.load %arg2[%c3_57, %c1_58, %c0_59, %c0_60] : memref<4x2x6x128xf32, #tpu.memory_space<vmem>>, vector<1x1x6x128xf32>
    %69 = vector.shape_cast %68 : vector<1x1x6x128xf32> to vector<6x128xf32>
    %70 = vector.broadcast %63 : vector<1x128xf32> to vector<6x128xf32>
    %71 = arith.mulf %70, %67 : vector<6x128xf32>
    %72 = vector.broadcast %65 : vector<1x128xf32> to vector<6x128xf32>
    %73 = arith.mulf %72, %69 : vector<6x128xf32>
    %74 = arith.subf %71, %73 : vector<6x128xf32>
    %75 = arith.addf %55, %74 : vector<6x128xf32>
    %76 = vector.broadcast %63 : vector<1x128xf32> to vector<6x128xf32>
    %77 = arith.mulf %76, %69 : vector<6x128xf32>
    %78 = vector.broadcast %65 : vector<1x128xf32> to vector<6x128xf32>
    %79 = arith.mulf %78, %67 : vector<6x128xf32>
    %80 = arith.addf %77, %79 : vector<6x128xf32>
    %81 = arith.addf %61, %80 : vector<6x128xf32>
    %c0_61 = arith.constant 0 : index
    %c0_62 = arith.constant 0 : index
    %c0_63 = arith.constant 0 : index
    %c0_64 = arith.constant 0 : index
    %82 = vector.load %arg3[%c0_61, %c0_62, %c0_63, %c0_64] : memref<1x2x6x128xf32, #tpu.memory_space<vmem>>, vector<1x1x6x128xf32>
    %83 = vector.shape_cast %82 : vector<1x1x6x128xf32> to vector<6x128xf32>
    %84 = vector.shape_cast %75 : vector<6x128xf32> to vector<1x1x6x128xf32>
    tpu.vector_store %arg3[%c0_61, %c0_62, %c0_63, %c0_64], %84 {strides = array<i32>} : memref<1x2x6x128xf32, #tpu.memory_space<vmem>>, vector<1x1x6x128xf32>,
    %c0_65 = arith.constant 0 : index
    %c1_66 = arith.constant 1 : index
    %c0_67 = arith.constant 0 : index
    %c0_68 = arith.constant 0 : index
    %85 = vector.load %arg3[%c0_65, %c1_66, %c0_67, %c0_68] : memref<1x2x6x128xf32, #tpu.memory_space<vmem>>, vector<1x1x6x128xf32>
    %86 = vector.shape_cast %85 : vector<1x1x6x128xf32> to vector<6x128xf32>
    %87 = vector.shape_cast %81 : vector<6x128xf32> to vector<1x1x6x128xf32>
    tpu.vector_store %arg3[%c0_65, %c1_66, %c0_67, %c0_68], %87 {strides = array<i32>} : memref<1x2x6x128xf32, #tpu.memory_space<vmem>>, vector<1x1x6x128xf32>,
    return
  }
  func.func @transform_0(%arg0: i32) -> (i32, i32, i32, i32) {
    %c0_i32 = arith.constant 0 : i32
    %c0_i32_0 = arith.constant 0 : i32
    %c0_i32_1 = arith.constant 0 : i32
    %c0_i32_2 = arith.constant 0 : i32
    return %c0_i32, %arg0, %c0_i32_0, %c0_i32_1 : i32, i32, i32, i32
  }
  func.func @transform_1(%arg0: i32) -> (i32, i32, i32, i32) {
    %c0_i32 = arith.constant 0 : i32
    %c0_i32_0 = arith.constant 0 : i32
    %c0_i32_1 = arith.constant 0 : i32
    %c0_i32_2 = arith.constant 0 : i32
    %c0_i32_3 = arith.constant 0 : i32
    return %c0_i32, %c0_i32_0, %c0_i32_1, %c0_i32_2 : i32, i32, i32, i32
  }
  func.func @transform_2(%arg0: i32) -> (i32, i32, i32, i32) {
    %c0_i32 = arith.constant 0 : i32
    %c0_i32_0 = arith.constant 0 : i32
    %c0_i32_1 = arith.constant 0 : i32
    %c0_i32_2 = arith.constant 0 : i32
    return %arg0, %c0_i32, %c0_i32_0, %c0_i32_1 : i32, i32, i32, i32
  }
}

</mosaic_0001>

<bundles_post_ra>
// kernel: tpu_custom_call.1
= control target key start
LH: loop header
LB: loop body
LE: loop exit
PB: predicated region body
PF: predicated region fallthrough
CT: control target
= control target key end

     0   :  { %s451_s9 = smov 0   ;;  %s453_s10 = smov 0   ;;  %s538_s0 = inlined_call_operand.vmem [shape: f32[4,2,2,128], index: 0, kind: input, shape index: {}]   ;;  %s539_s1 = inlined_call_operand.vmem [shape: f32[4,2,6,128], index: 1, kind: input, shape index: {}]   ;;  %s540_s2 = inlined_call_operand.vmem [shape: f32[2,2,6,128], index: 2, kind: output, shape index: {}]  }
   0x1   :  { %s455_s11 = smov 0  }
   0x2 LB: > { %s353_s12 = sadd.s32 4294967295, %s434_s11   ;;  %s468_s13 = sadd.s32 1, %s434_s11   ;;  %s434_s11 = sphi %s455_s11, %s544_s11   ;;  %s430_s10 = sphi %s453_s10, %s543_s10   ;;  %s426_s9 = sphi %s451_s9, %s542_s9  }
   0x3   : > { %s16_s14 = ssub.s32 %s434_s11, %s468_s13  ;;  %s19_s15 = sadd.s32 1, %s430_s10 }
   0x4   : > { %p17_p0 = scmp.eq.s32.totalorder %s16_s14, 0  ;;  %p26_p1 = scmp.ne.s32.totalorder %s430_s10, %s426_s9 }
   0x5   : > { %p27_p2 = scmp.eq.s32.totalorder %s434_s11, 0  ;;  %p356_p4 = scmp.ge.s32.totalorder %s434_s11, 2 }
   0x6   : > { %s477_s16 = scalar_select %p17_p0, %s430_s10, %s19_s15  }
   0x7   : > { %p28_p3 = por %p27_p2, %p26_p1  ;;  %102 = sbr.rel (%p356_p4) target bundleno = 18 (0x12), region = 20 }
   0xc   : > { %105 = sbr.rel (!%p28_p3) target bundleno = 18 (0x12), region = 24  ;;  %s107_s17 = sand.u32 (%p28_p3), 1, %s430_s10  }
   0xd   : > { %s358_s18 = sshll.u32 (%p28_p3), %s434_s11, 1  ;;  %s357_s19 = sshll.u32 (%p28_p3), %s107_s17, 3 }
   0xe   : > { %s111_s22 = scalar_lea.vmem (%p28_p3), %s538_s0, %s358_s18  ;;  %s109_s23 = scalar_lea.vmem (%p28_p3), [#allocation2], %s357_s19 }
   0xf   : > { %v128_v0 = vld [vmem:[%s111_s22] sm:$0x3] (%p28_p3)  ;;  %v130_v1 = vld [vmem:[%s111_s22 + $0x4] sm:$0x3] (%p28_p3)  ;;  %v132_v2 = vld [vmem:[%s111_s22 + $0x8] sm:$0x3] (%p28_p3) }
  0x10   : > { %129 = vst [vmem:[%s109_s23] sm:$0x3] (%p28_p3), %v128_v0  ;;  %131 = vst [vmem:[%s109_s23 + $0x2] sm:$0x3] (%p28_p3), %v130_v1  ;;  %v134_v3 = vld [vmem:[%s111_s22 + $0xc] sm:$0x3] (%p28_p3) }
  0x11   : > { %133 = vst [vmem:[%s109_s23 + $0x4] sm:$0x3] %v132_v2  ;;  %135 = vst [vmem:[%s109_s23 + $0x6] sm:$0x3] %v134_v3 }
  0x12 PF: > { %p359_p5 = scmp.ge.s32.totalorder %s434_s11, 1  ;;  %p166_p6 = scmp.lt.s32.totalorder %s434_s11, 3 }
  0x14   : > { %p167_p7 = pnand %p359_p5, %p166_p6 }
  0x15   : > { %s173_s24 = sand.u32 (!%p167_p7), 1, %s426_s9   ;;  %p493_p8 = scmp.lt.s32.totalorder (!%p167_p7), %s353_s12, 1 }
  0x16   : > { %170 = sbr.rel (%p167_p7) target bundleno = 43 (0x2b), region = 65  ;;  %s360_s27 = sshll.u32 (!%p167_p7), %s173_s24, 3 }
  0x17   : > { %s175_s9 = scalar_lea.vmem (!%p167_p7), [#allocation2], %s360_s27 }
  0x1b   : > { %v201_v4 = vld [vmem:[%s539_s1] sm:$0x3f]  ;;  %v363_v5 = vld [vmem:[%s539_s1 + $0x8] sm:$0x3f]  ;;  %v368_v6 = vld [vmem:[%s539_s1 + $0x10] sm:$0x3f] }
  0x1c   : > { %v369_v7 = vld [vmem:[%s539_s1 + $0x18] sm:$0x3f]  ;;  %v374_v8 = vld [vmem:[%s539_s1 + $0x20] sm:$0x3f]  ;;  %v375_v11 = vld [vmem:[%s539_s1 + $0x28] sm:$0x3f] }
  0x1d   : > { %v364_v9 = vld [vmem:[%s175_s9] ss:$0 sm:$0xff]  ;;  %v365_v10 = vld [vmem:[%s175_s9 + $0x1] ss:$0 sm:$0xff]  ;;  %v370_v14 = vld [vmem:[%s175_s9 + $0x2] ss:$0 sm:$0xff] }
  0x1e   : > { %v208_v12 = vmul.f32 %v364_v9, %v201_v4  ;;  %v213_v13 = vmul.f32 %v365_v10, %v363_v5  ;;  %v371_v15 = vld [vmem:[%s175_s9 + $0x3] ss:$0 sm:$0xff]  ;;  %v376_v16 = vld [vmem:[%s175_s9 + $0x4] ss:$0 sm:$0xff]  ;;  %v216_v17 = vmul.f32 %v364_v9, %v363_v5  ;;  %v217_v18 = vmul.f32 %v365_v10, %v201_v4  ;;  %s546_s12 = smov (!%p493_p8, %s353_s12), 1 }
  0x1f   : > { %v231_v19 = vmul.f32 %v370_v14, %v368_v6  ;;  %v236_v20 = vmul.f32 %v371_v15, %v369_v7  ;;  %v377_v21 = vld [vmem:[%s175_s9 + $0x5] ss:$0 sm:$0xff]  ;;  %v254_v22 = vmul.f32 %v376_v16, %v374_v8  ;;  %v382_v23 = vld [vmem:[%s175_s9 + $0x6] ss:$0 sm:$0xff]  ;;  %v239_v24 = vmul.f32 %v370_v14, %v369_v7  ;;  %v383_v27 = vld [vmem:[%s175_s9 + $0x7] ss:$0 sm:$0xff] }
  0x20   : > { %v214_v25 = vsub.f32 %v208_v12, %v213_v13  ;;  %v259_v26 = vmul.f32 %v377_v21, %v375_v11  ;;  %v380_v28 = vld [vmem:[%s539_s1 + $0x30] sm:$0x3f]  ;;  %v381_v29 = vld [vmem:[%s539_s1 + $0x38] sm:$0x3f]  ;;  %v218_v30 = vadd.f32 %v217_v18, %v216_v17  ;;  %v240_v31 = vmul.f32 %v371_v15, %v368_v6  ;;  %s387_s11 = sshll.u32 %s546_s12, 4 }
  0x21   : > { %v237_v32 = vsub.f32 %v231_v19, %v236_v20  ;;  %v277_v33 = vmul.f32 %v382_v23, %v380_v28  ;;  %v282_v34 = vmul.f32 %v383_v27, %v381_v29  ;;  %v262_v35 = vmul.f32 %v376_v16, %v375_v11  ;;  %s198_s23 = scalar_lea.vmem %s540_s2, %s387_s11 }
  0x22   : > { %v260_v36 = vsub.f32 %v254_v22, %v259_v26  ;;  %v241_v37 = vadd.f32 %v240_v31, %v239_v24  ;;  %v263_v38 = vmul.f32 %v377_v21, %v374_v8  ;;  %v285_v39 = vmul.f32 %v382_v23, %v381_v29 }
  0x23   : > { %v238_v40 = vadd.f32 %v237_v32, %v214_v25  ;;  %v283_v41 = vsub.f32 %v277_v33, %v282_v34  ;;  %v286_v42 = vmul.f32 %v383_v27, %v380_v28 }
  0x24   : > { %v242_v43 = vadd.f32 %v241_v37, %v218_v30  ;;  %v264_v44 = vadd.f32 %v263_v38, %v262_v35 }
  0x25   : > { %v261_v45 = vadd.f32 %v260_v36, %v238_v40  ;;  %v287_v46 = vadd.f32 %v286_v42, %v285_v39 }
  0x26   : > { %v265_v47 = vadd.f32 %v264_v44, %v242_v43 }
  0x27   : > { %v284_v48 = vadd.f32 %v283_v41, %v261_v45 }
  0x28   : > { %v288_v49 = vadd.f32 %v287_v46, %v265_v47 }
  0x29   : > { %289 = vst [vmem:[%s198_s23] sm:$0x3f] %v284_v48 }
  0x2a   : > { %384 = vst [vmem:[%s198_s23 + $0x8] sm:$0x3f] %v288_v49 }
  0x2b PF: > { %p9_p9 = scmp.ge.s32.totalorder %s468_s13, 4   ;;  %s542_s9 = smov %s430_s10 }
  0x2c   : > { %s543_s10 = smov %s477_s16  ;;  %s544_s11 = smov %s468_s13 }
  0x2d   :  { %11 = sbr.rel (!%p9_p9) target bundleno = 2 (0x2), region = 115 }

</bundles_post_ra>
